<compile_context>
chip_gen: v6e
topology: v6e:2x2x1
jax: 0.10.0
libtpu: 0.0.40
codegen_flags: <defaults>
</compile_context>

<pallas_src>
import functools

import jax
import jax.numpy as jnp
from jax.experimental import pallas as pl
from jax.experimental.pallas import tpu as pltpu


def _rpn_head_kernel(patch_ref, w1t_ref, b1_ref, wht_ref, bh_ref, out_ref):
    # patch_ref: (1, 9C, HW)  bf16   im2col patches for one batch item (lane dim = HW)
    # w1t_ref  : (C, 9C)      bf16   3x3 conv weight, transposed & flattened
    # b1_ref   : (C, 1)       f32    3x3 conv bias
    # wht_ref  : (5A, C)      bf16   fused [class | bbox] 1x1 weights, transposed
    # bh_ref   : (5A, 1)      f32    fused [class | bbox] biases
    # out_ref  : (1, 5A, HW)  f32    fused head output (channel-major, lane dim = HW)

    # 3x3 conv as a single MXU contraction over K = 9*C  -> (C, HW) f32 accumulation.
    conv = jnp.dot(w1t_ref[...], patch_ref[0],
                   preferred_element_type=jnp.float32)

    # bias + ReLU on the VPU, in f32.
    feat = jnp.maximum(conv + b1_ref[...], 0.0)            # (C, HW) f32

    # fused class/bbox heads: one matmul, bf16 operands, f32 accumulation.
    head = jnp.dot(wht_ref[...], feat.astype(jnp.bfloat16),
                   preferred_element_type=jnp.float32) + bh_ref[...]

    out_ref[0] = head                                      # lane-dense (5A, HW) store


@jax.jit
def rpn_head_forward(x_nchw, w1, b1, wc, bc, wb, bb):
    """Forward pass of RPNHead on a single feature map.

    x_nchw: (B, C, H, W) float32
    w1    : (3, 3, Cin, Cout) 3x3 conv weight   (torch layout (Cout,Cin,3,3) would be
                                                 permuted to this in a real bridge)
    b1    : (C,)
    wc    : (C, A)    1x1 class-pred weight (as a matmul)
    bc    : (A,)
    wb    : (C, 4A)   1x1 bbox-pred weight
    bb    : (4A,)
    returns (class_pred, bbox_pred) in NCHW: (B, A, H, W), (B, 4A, H, W)
    """
    B, C, H, W = x_nchw.shape
    A = wc.shape[-1]
    HW = H * W
    K = 9 * C
    NO = 5 * A  # fused head output channels

    # --- im2col in the wrapper: (B, 9*C, H*W), channel-major so H*W is the lane dim ---
    xp = jnp.pad(x_nchw, ((0, 0), (0, 0), (1, 1), (1, 1)))            # zero halo
    patches = jnp.stack(
        [xp[:, :, dy:dy + H, dx:dx + W] for dy in range(3) for dx in range(3)],
        axis=1)                                                       # (B, 9, C, H, W)
    patches = patches.reshape(B, K, HW).astype(jnp.bfloat16)          # bf16 MXU operand

    # --- weight prep: transpose/flatten so the kernel sees pure matmuls ---
    w1t = w1.reshape(K, C).T.astype(jnp.bfloat16)                     # (C, 9C)
    b1c = b1.reshape(C, 1).astype(jnp.float32)

    wht = jnp.concatenate([wc, wb], axis=-1).T.astype(jnp.bfloat16)   # (5A, C)
    bh = jnp.concatenate([bc, bb], axis=-1).reshape(NO, 1).astype(jnp.float32)

    out = pl.pallas_call(
        _rpn_head_kernel,
        out_shape=jax.ShapeDtypeStruct((B, NO, HW), jnp.float32),
        grid=(B,),
        in_specs=[
            pl.BlockSpec((1, K, HW), lambda b: (b, 0, 0)),
            pl.BlockSpec((C, K), lambda b: (0, 0)),
            pl.BlockSpec((C, 1), lambda b: (0, 0)),
            pl.BlockSpec((NO, C), lambda b: (0, 0)),
            pl.BlockSpec((NO, 1), lambda b: (0, 0)),
        ],
        out_specs=pl.BlockSpec((1, NO, HW), lambda b: (b, 0, 0)),
        compiler_params=pltpu.CompilerParams(
            dimension_semantics=("parallel",)),
    )(patches, w1t, b1c, wht, bh)

    out = out.reshape(B, NO, H, W)            # free reshape, already channel-major
    class_pred = out[:, :A]                   # (B, A, H, W)
    bbox_pred = out[:, A:]                    # (B, 4A, H, W)
    return class_pred, bbox_pred


def _reference_forward(x_nchw, w1, b1, wc, bc, wb, bb):
    """Pure-JAX f32 reference (same math as the PyTorch module) for verification."""
    B, C, H, W = x_nchw.shape
    A = wc.shape[-1]
    xp = jnp.pad(x_nchw, ((0, 0), (0, 0), (1, 1), (1, 1)))
    conv = jnp.zeros((B, C, H, W), dtype=jnp.float32)
    for dy in range(3):
        for dx in range(3):
            conv = conv + jnp.einsum(
                "bchw,cd->bdhw", xp[:, :, dy:dy + H, dx:dx + W], w1[dy, dx])
    feat = jnp.maximum(conv + b1[None, :, None, None], 0.0)
    cls = jnp.einsum("bchw,ca->bahw", feat, wc) + bc[None, :, None, None]
    box = jnp.einsum("bchw,ca->bahw", feat, wb) + bb[None, :, None, None]
    return cls, box


if __name__ == "__main__":
    # Small shapes consistent with the module: batch=2, in_channels=4,
    # spatial=16x16, num_anchors=3.
    B, C, H, W = 2, 4, 16, 16
    A = 3

    key = jax.random.PRNGKey(0)
    kx, kw1, kwc, kwb = jax.random.split(key, 4)

    x = jax.random.normal(kx, (B, C, H, W), dtype=jnp.float32)

    # Deterministic synthetic init matching the module's __init__:
    # weights ~ N(0, 0.01), biases = 0.
    std = 0.01
    w1 = std * jax.random.normal(kw1, (3, 3, C, C), dtype=jnp.float32)  # (kh,kw,Cin,Cout)
    b1 = jnp.zeros((C,), dtype=jnp.float32)
    wc = std * jax.random.normal(kwc, (C, A), dtype=jnp.float32)        # 1x1 conv -> matmul
    bc = jnp.zeros((A,), dtype=jnp.float32)
    wb = std * jax.random.normal(kwb, (C, 4 * A), dtype=jnp.float32)
    bb = jnp.zeros((4 * A,), dtype=jnp.float32)

    cls_out, box_out = rpn_head_forward(x, w1, b1, wc, bc, wb, bb)
    jax.block_until_ready((cls_out, box_out))

    cls_ref, box_ref = _reference_forward(x, w1, b1, wc, bc, wb, bb)
    assert cls_out.shape == (B, A, H, W)
    assert box_out.shape == (B, 4 * A, H, W)
    # bf16 MXU operands (f32 accumulation) vs. the f32 reference -> relaxed tolerances.
    assert jnp.allclose(cls_out, cls_ref, atol=2e-3, rtol=2e-2)
    assert jnp.allclose(box_out, box_ref, atol=2e-3, rtol=2e-2)

    print("KERNEL_OK")
</pallas_src>

<mosaic_0001>
module attributes {stable_mosaic.version = 11 : i64} {
  func.func @_rpn_head_kernel(%arg0: i32, %arg1: memref<1x36x256xbf16, #tpu.memory_space<vmem>>, %arg2: memref<4x36xbf16, #tpu.memory_space<vmem>>, %arg3: memref<4x1xf32, #tpu.memory_space<vmem>>, %arg4: memref<15x4xbf16, #tpu.memory_space<vmem>>, %arg5: memref<15x1xf32, #tpu.memory_space<vmem>>, %arg6: memref<1x15x256xf32, #tpu.memory_space<vmem>>) attributes {dimension_semantics = [#tpu.dimension_semantics<parallel>], iteration_bounds = array<i64: 2>, scalar_prefetch = 0 : i64, scratch_operands = 0 : i64, tpu.core_type = #tpu.core_type<tc>, window_params = [{transform_indices = @transform_0, window_bounds = array<i64: 1, 36, 256>}, {pipeline_mode = #tpu.pipeline_mode<synchronous>, transform_indices = @transform_1, window_bounds = array<i64: 4, 36>}, {pipeline_mode = #tpu.pipeline_mode<synchronous>, transform_indices = @transform_2, window_bounds = array<i64: 4, 1>}, {pipeline_mode = #tpu.pipeline_mode<synchronous>, transform_indices = @transform_3, window_bounds = array<i64: 15, 4>}, {pipeline_mode = #tpu.pipeline_mode<synchronous>, transform_indices = @transform_4, window_bounds = array<i64: 15, 1>}, {transform_indices = @transform_5, window_bounds = array<i64: 1, 15, 256>}]} {
    %c0 = arith.constant 0 : index
    %c0_0 = arith.constant 0 : index
    %0 = vector.load %arg2[%c0, %c0_0] : memref<4x36xbf16, #tpu.memory_space<vmem>>, vector<4x36xbf16>
    %c0_1 = arith.constant 0 : index
    %c0_2 = arith.constant 0 : index
    %c0_3 = arith.constant 0 : index
    %1 = vector.load %arg1[%c0_1, %c0_2, %c0_3] : memref<1x36x256xbf16, #tpu.memory_space<vmem>>, vector<1x36x256xbf16>
    %2 = vector.shape_cast %1 : vector<1x36x256xbf16> to vector<36x256xbf16>
    %cst = arith.constant dense<0.000000e+00> : vector<4x256xf32>
    %3 = tpu.matmul %0, %2, %cst {dimension_numbers = #tpu.dot_dimension_numbers<[1], [0], [0], [1], [0, 0, 1, 1], [], []>} : vector<4x36xbf16>, vector<36x256xbf16>, vector<4x256xf32> -> vector<4x256xf32>
    %c0_4 = arith.constant 0 : index
    %c0_5 = arith.constant 0 : index
    %4 = vector.load %arg3[%c0_4, %c0_5] : memref<4x1xf32, #tpu.memory_space<vmem>>, vector<4x1xf32>
    %5 = vector.broadcast %4 : vector<4x1xf32> to vector<4x256xf32>
    %6 = arith.addf %3, %5 : vector<4x256xf32>
    %cst_6 = arith.constant 0.000000e+00 : f32
    %7 = vector.broadcast %cst_6 : f32 to vector<4x256xf32>
    %8 = arith.maximumf %6, %7 : vector<4x256xf32>
    %c0_7 = arith.constant 0 : index
    %c0_8 = arith.constant 0 : index
    %9 = vector.load %arg4[%c0_7, %c0_8] : memref<15x4xbf16, #tpu.memory_space<vmem>>, vector<15x4xbf16>
    %10 = arith.truncf %8 : vector<4x256xf32> to vector<4x256xbf16>
    %cst_9 = arith.constant dense<0.000000e+00> : vector<15x256xf32>
    %11 = tpu.matmul %9, %10, %cst_9 {dimension_numbers = #tpu.dot_dimension_numbers<[1], [0], [0], [1], [0, 0, 1, 1], [], []>} : vector<15x4xbf16>, vector<4x256xbf16>, vector<15x256xf32> -> vector<15x256xf32>
    %c0_10 = arith.constant 0 : index
    %c0_11 = arith.constant 0 : index
    %12 = vector.load %arg5[%c0_10, %c0_11] : memref<15x1xf32, #tpu.memory_space<vmem>>, vector<15x1xf32>
    %13 = vector.broadcast %12 : vector<15x1xf32> to vector<15x256xf32>
    %14 = arith.addf %11, %13 : vector<15x256xf32>
    %c0_12 = arith.constant 0 : index
    %c0_13 = arith.constant 0 : index
    %c0_14 = arith.constant 0 : index
    %15 = vector.load %arg6[%c0_12, %c0_13, %c0_14] : memref<1x15x256xf32, #tpu.memory_space<vmem>>, vector<1x15x256xf32>
    %16 = vector.shape_cast %15 : vector<1x15x256xf32> to vector<15x256xf32>
    %17 = vector.shape_cast %14 : vector<15x256xf32> to vector<1x15x256xf32>
    tpu.vector_store %arg6[%c0_12, %c0_13, %c0_14], %17 {strides = array<i32>} : memref<1x15x256xf32, #tpu.memory_space<vmem>>, vector<1x15x256xf32>,
    return
  }
  func.func @transform_0(%arg0: i32) -> (i32, i32, i32) {
    %c0_i32 = arith.constant 0 : i32
    %c0_i32_0 = arith.constant 0 : i32
    %c0_i32_1 = arith.constant 0 : i32
    return %arg0, %c0_i32, %c0_i32_0 : i32, i32, i32
  }
  func.func @transform_1(%arg0: i32) -> (i32, i32) {
    %c0_i32 = arith.constant 0 : i32
    %c0_i32_0 = arith.constant 0 : i32
    %c0_i32_1 = arith.constant 0 : i32
    return %c0_i32, %c0_i32_0 : i32, i32
  }
  func.func @transform_2(%arg0: i32) -> (i32, i32) {
    %c0_i32 = arith.constant 0 : i32
    %c0_i32_0 = arith.constant 0 : i32
    %c0_i32_1 = arith.constant 0 : i32
    return %c0_i32, %c0_i32_0 : i32, i32
  }
  func.func @transform_3(%arg0: i32) -> (i32, i32) {
    %c0_i32 = arith.constant 0 : i32
    %c0_i32_0 = arith.constant 0 : i32
    %c0_i32_1 = arith.constant 0 : i32
    return %c0_i32, %c0_i32_0 : i32, i32
  }
  func.func @transform_4(%arg0: i32) -> (i32, i32) {
    %c0_i32 = arith.constant 0 : i32
    %c0_i32_0 = arith.constant 0 : i32
    %c0_i32_1 = arith.constant 0 : i32
    return %c0_i32, %c0_i32_0 : i32, i32
  }
  func.func @transform_5(%arg0: i32) -> (i32, i32, i32) {
    %c0_i32 = arith.constant 0 : i32
    %c0_i32_0 = arith.constant 0 : i32
    %c0_i32_1 = arith.constant 0 : i32
    return %arg0, %c0_i32, %c0_i32_0 : i32, i32, i32
  }
}

</mosaic_0001>

<bundles_post_ra>
// kernel: rpn_head_forward.1
= control target key start
LH: loop header
LB: loop body
LE: loop exit
PB: predicated region body
PF: predicated region fallthrough
CT: control target
= control target key end

     0   :  { %s532_s18 = smov 0   ;;  %s572_s0 = inlined_call_operand.vmem [shape: bf16[2,36,256], index: 0, kind: input, shape index: {}]   ;;  %s573_s1 = inlined_call_operand.vmem [shape: bf16[4,36], index: 1, kind: input, shape index: {}]   ;;  %s574_s2 = inlined_call_operand.vmem [shape: f32[4,1], index: 2, kind: input, shape index: {}]   ;;  %s575_s3 = inlined_call_operand.vmem [shape: bf16[15,4], index: 3, kind: input, shape index: {}]   ;;  %s576_s4 = inlined_call_operand.vmem [shape: f32[15,1], index: 4, kind: input, shape index: {}]   ;;  %s577_s5 = inlined_call_operand.vmem [shape: f32[2,15,256], index: 5, kind: output, shape index: {}]  }
   0x1 LB: > { %s450_s19 = sadd.s32 4294967295, %s499_s18   ;;  %p454_p0 = scmp.ge.s32.totalorder %s499_s18, 1  ;;  %s499_s18 = sphi %s532_s18, %s15_s18  }
   0x2   : > { %p187_p1 = scmp.lt.s32.totalorder %s499_s18, 3 }
   0x4   : > { %p188_p2 = pnand %p454_p0, %p187_p1 }
   0x5   : > { %p215_p3 = scmp.lt.s32.totalorder (!%p188_p2), %s450_s19, 1 }
   0x6   : > { %191 = sbr.rel (%p188_p2) target bundleno = 437 (0x1b5), region = 40 }
   0xb   : > { %v501_v0 = vmov 0   ;;  %v232_v1 = vld [vmem:[%s574_s2] sm:$0xf]  ;;  %s579_s19 = smov (!%p215_p3, %s450_s19), 1  ;;  %vm267_vm0 = vcmask 1041408   ;;  %vm263_vm1 = vcmask 293888  }
   0xc   : > { %306 = vmatprep.mubr.bf16.mxu0 %v501_v0  ;;  %482 = vset.pattern.permute.xlu0 %v501_v0  ;;  %v321_v2 = vld [vmem:[%s576_s4] sm:$0xff]  ;;  %s472_s24 = smul.u32 40, %s579_s19  ;;  %v322_v12 = vld [vmem:[%s576_s4 + $0x8] sm:$0x7f]  ;;  %vm338_vm2 = vcmask 31744   ;;  %s471_s9 = sshll.u32 %s579_s19, 5 }
   0xd   : > { %235 = vperm.xlu0 %482, %v232_v1   ;;  %380 = vmatprep.mubr.bf16.mxu1 %v501_v0  ;;  %v226_v11 = vld [vmem:[%s573_s1] sm:$0x3]  ;;  %s224_s12 = scalar_lea.vmem %s577_s5, %s471_s9 }
   0xe   : > { %483 = vset.pattern.permute.xlu1 %v501_v0  ;;  %s219_s27 = scalar_lea.vmem %s572_s0, %s472_s24  ;;  %v492_v25 = vld [vmem:[%s575_s3] sm:$0xff]  }
   0xf   : > { %v231_v3 = vld [vmem:[%s219_s27 + $0x20] sm:$0x33]  ;;  %v486_v6 = vld [vmem:[%s219_s27 + $0x14] ss:$8 sps:$4 sm:$0xff]   ;;  %v488_v8 = vld [vmem:[%s219_s27 + $0x10] ss:$8 sps:$4 sm:$0xff]   ;;  %330 = vperm.xlu1 %483, %v322_v12  }
  0x10   : > { %v463_v4 = vcombine.high %v231_v3, %v231_v3  ;;  %v462_v5 = vcombine.low %v231_v3, %v231_v3  ;;  %v489_v9 = vld [vmem:[%s219_s27 + $0x4] ss:$8 sps:$4 sm:$0xff]   ;;  %v491_v10 = vld [vmem:[%s219_s27] ss:$8 sps:$4 sm:$0xff]  }
  0x11   : > { %325 = vperm.xlu0 %482, %v321_v2  }
  0x12   : > { %464 = vmatprep.subr.msk.bf16.mxu0 %vm267_vm0, %v463_v4  ;;  %v269_v7 = vsel %vm267_vm0, %v462_v5, 0 }
  0x13   : > { %285 = vmatpush1.bf16.msra.mxu0 %v269_v7 }
  0x14   : > { %286 = vmatprep.subr.bf16.mxu0 %v486_v6 }
  0x17   : > { %287 = vmatpush1.bf16.msra.mxu0 %v488_v8 }
  0x18   : > { %288 = vmatprep.subr.bf16.mxu0 %v489_v9 }
  0x1b   : > { %289 = vmatpush1.bf16.msra.mxu0 %v491_v10 }
  0x1e   : > { %465 = vmatmul.mubr.msk.bf16.vlgmr.msra.gmra.mxu0 %vm263_vm1, %v226_v11 }
  0x88   : > { %v236_v13 = vpop.permute.xlu0 %235 }
  0x8a   : > { %v331_v30 = vpop.permute.xlu1 %330 }
  0x8c   : > { %v326_v26 = vpop.permute.xlu0 %325 }
  0xde   : > { %v308_v14 = vpop.f32.mrf.mxu0 }
  0xdf   : > { %v309_v15 = vadd.f32 %v308_v14, %v236_v13 }
  0xe0   : > { %v310_v16 = vpop.f32.mrf.mxu0 }
  0xe1   : > { %v315_v17 = vmax.f32 %v309_v15, 0.0  ;;  %v311_v18 = vadd.f32 %v310_v16, %v236_v13 }
  0xe2   : > { %v312_v19 = vpop.f32.mrf.mxu0 }
  0xe3   : > { %v319_v20 = vpack.c.bf16 %v315_v17, %v315_v17  ;;  %v316_v21 = vmax.f32 %v311_v18, 0.0 }
  0xe4   : > { %v313_v22 = vpop.f32.mrf.mxu0 }
  0xe5   : > { %v320_v23 = vpack.c.bf16 %v316_v21, %v316_v21  ;;  %v343_v24 = vsel %vm267_vm0, %v319_v20, 0 }
  0xe7   : > { %467 = vmatprep.subr.msk.bf16.mxu1 %vm267_vm0, %v320_v23 }
  0xe8   : > { %363 = vmatpush1.bf16.msra.mxu1 %v343_v24 }
  0xeb   : > { %468 = vmatmul.mubr.msk.bf16.vlgmr.msra.gmra.mxu1 %vm338_vm2, %v492_v25 }
 0x1ab   : > { %v382_v27 = vpop.f32.mrf.mxu1 }
 0x1ac   : > { %v383_v28 = vadd.f32 %v382_v27, %v326_v26 }
 0x1ad   : > { %v384_v29 = vpop.f32.mrf.mxu1 }
 0x1ae   : > { %391 = vst [vmem:[%s224_s12] sm:$0xff] %v383_v28  ;;  %v385_v31 = vadd.f32 %v384_v29, %v326_v26 }
 0x1af   : > { %v386_v32 = vpop.f32.mrf.mxu1 }
 0x1b0   : > { %392 = vst [vmem:[%s224_s12 + $0x8] sm:$0xff] %v385_v31  ;;  %v387_v33 = vadd.f32 %v386_v32, %v331_v30 }
 0x1b1   : > { %v388_v34 = vpop.f32.mrf.mxu1 }
 0x1b2   : > { %393 = vst [vmem:[%s224_s12 + $0x10] sm:$0x7f] %v387_v33  ;;  %v389_v35 = vadd.f32 %v388_v34, %v331_v30 }
 0x1b4   : > { %394 = vst [vmem:[%s224_s12 + $0x18] sm:$0x7f] %v389_v35 }
 0x1b5 PF: > { %s15_s18 = sadd.s32 1, %s499_s18  }
 0x1b6   : > { %p12_p4 = scmp.ge.s32.totalorder %s15_s18, 4  }
 0x1b8   :  { %14 = sbr.rel (!%p12_p4) target bundleno = 1 (0x1), region = 70 }

</bundles_post_ra>
